<compile_context>
chip_gen: v7x
topology: tpu7x:2x2x1
jax: 0.10.0
libtpu: 0.0.40
codegen_flags: <defaults>
</compile_context>

<pallas_src>
import math
import functools

import jax
import jax.numpy as jnp
from jax.experimental import pallas as pl
from jax.experimental.pallas import tpu as pltpu

LANE = 128
ROW_TARGET = 512  # target rows (B_tile * S) per grid step to fill the MXU M dimension


def _round_up(n, m):
    return ((n + m - 1) // m) * m


def _pad2(a, rows, cols):
    r, c = a.shape
    return jnp.pad(a, ((0, rows - r), (0, cols - c)))


# --------------------------------------------------------------------------------------
# Kernel
# --------------------------------------------------------------------------------------
def _resblock_kernel(
    x_ref,       # (bb, S, Dp)     f32, zero-padded beyond Din
    wx_ref,      # (Dp, 2*Hp)      [w1 | wsc]          (matmul_dtype)
    bx_ref,      # (1,  2*Hp)      [b1 | bsc]          (f32)
    wqkv_ref,    # (Hp, 3*Hp)      [wq/sqrt(H) | wk | wv]
    bqkv_ref,    # (1,  3*Hp)      [bq/sqrt(H) | bk | bv]
    w2_ref,      # (Hp, Hp)
    b2_ref,      # (1,  Hp)
    o_ref,       # (bb, S, Hp)
    *,
    hp,          # padded hidden dim (lane multiple)
    matmul_dtype,
):
    bb, s, dp = x_ref.shape
    n = bb * s
    md = matmul_dtype

    x2 = x_ref[...].reshape(n, dp).astype(md)

    # --- fused linear1 | shortcut : one (n, Dp) @ (Dp, 2*Hp) MXU call -----------------
    xw = jnp.dot(x2, wx_ref[...], preferred_element_type=jnp.float32) + bx_ref[...]
    h = jnp.maximum(xw[:, :hp], 0.0)          # ReLU(linear1(x))  (n, Hp), f32
    sc = xw[:, hp:]                           # shortcut(x)       (n, Hp), f32

    # --- fused Q | K | V : one (n, Hp) @ (Hp, 3*Hp) MXU call --------------------------
    # (1/sqrt(H) attention scale is pre-folded into wq / bq at weight-prep time.)
    qkv = jnp.dot(h.astype(md), wqkv_ref[...], preferred_element_type=jnp.float32) \
        + bqkv_ref[...]
    q = qkv[:, :hp].reshape(bb, s, hp)
    k = qkv[:, hp:2 * hp].reshape(bb, s, hp)
    v = qkv[:, 2 * hp:].reshape(bb, s, hp)

    # --- attention: batched matmuls, contraction over last dims (no explicit k.T) -----
    # TODO(synk): for large S, tile over the KV axis (flash-style online softmax, last
    #             "arbitrary" grid dim + VMEM accumulator) so the (S, S) score matrix
    #             never materializes in VMEM (required within v7x's 64 MiB budget).
    scores = jnp.einsum('bqd,bkd->bqk', q.astype(md), k.astype(md),
                        preferred_element_type=jnp.float32)
    m = jnp.max(scores, axis=-1, keepdims=True)
    e = jnp.exp(scores - m)
    denom = jnp.sum(e, axis=-1, keepdims=True)
    # Deferred normalization: PV first with unnormalized probs, then scale the (n, Hp)
    # result by the EUP reciprocal (cheaper than scaling the (n, S) matrix, and the
    # ordering needed for the future flash/online-softmax tiling).
    attn = jnp.einsum('bqk,bkd->bqd', e.astype(md), v.astype(md),
                      preferred_element_type=jnp.float32)
    attn = attn * pl.reciprocal(denom, approx=True)

    # --- residual add + linear2 + ReLU -------------------------------------------------
    r = attn.reshape(n, hp) + sc
    out = jnp.dot(r.astype(md), w2_ref[...], preferred_element_type=jnp.float32) \
        + b2_ref[...]
    o_ref[...] = jnp.maximum(out, 0.0).reshape(bb, s, hp).astype(o_ref.dtype)


# --------------------------------------------------------------------------------------
# One-time weight preparation (hoisted out of the hot path)
# --------------------------------------------------------------------------------------
def prepare_params(params, *, matmul_dtype=jnp.bfloat16):
    """Pad, fuse and pre-scale weights ONCE. Returns a dict consumed by the wrapper.

    Weights are stored in `matmul_dtype` (MXU operands); biases stay f32 (added after
    the f32-accumulated matmuls).
    """
    din, hidden = params["w1"].shape
    dp = _round_up(din, LANE)
    hp = _round_up(hidden, LANE)
    inv_scale = 1.0 / math.sqrt(hidden)   # torch: q @ k.T / sqrt(x.size(-1)) with x = h
    wd = matmul_dtype

    # TODO(synk): if production dims stay this small (<<128), pack multiple independent
    #             blocks/heads along the lane axis instead of zero-padding to 128.
    wx = jnp.concatenate([_pad2(params["w1"], dp, hp),
                          _pad2(params["wsc"], dp, hp)], axis=1).astype(wd)   # (Dp, 2Hp)
    bx = jnp.concatenate([_pad2(params["b1"], 1, hp),
                          _pad2(params["bsc"], 1, hp)], axis=1)               # (1, 2Hp)
    wqkv = jnp.concatenate([_pad2(params["wq"] * inv_scale, hp, hp),
                            _pad2(params["wk"], hp, hp),
                            _pad2(params["wv"], hp, hp)], axis=1).astype(wd)  # (Hp, 3Hp)
    bqkv = jnp.concatenate([_pad2(params["bq"] * inv_scale, 1, hp),
                            _pad2(params["bk"], 1, hp),
                            _pad2(params["bv"], 1, hp)], axis=1)              # (1, 3Hp)
    w2 = _pad2(params["w2"], hp, hp).astype(wd)                               # (Hp, Hp)
    b2 = _pad2(params["b2"], 1, hp)                                           # (1, Hp)

    return {"wx": wx, "bx": bx, "wqkv": wqkv, "bqkv": bqkv, "w2": w2, "b2": b2,
            "din": din, "hidden": hidden, "dp": dp, "hp": hp,
            "matmul_dtype": wd}


# --------------------------------------------------------------------------------------
# Wrapper (hot path)
# --------------------------------------------------------------------------------------
def residual_attention_block(x, fused):
    """x: (B, S, Din) float32. fused: output of prepare_params()."""
    B, S, Din = x.shape
    assert Din == fused["din"], "input feature dim mismatch with prepared params"
    Dp, Hp, H = fused["dp"], fused["hp"], fused["hidden"]
    md = fused["matmul_dtype"]

    # Batch-tile: feed >= ~ROW_TARGET rows per step to the MXU when B allows.
    bb = max(1, min(B, ROW_TARGET // max(S, 1)))
    Bp = _round_up(B, bb)

    # Only the activation is padded per call (zero rows/features contribute nothing).
    xp = jnp.pad(x, ((0, Bp - B), (0, 0), (0, Dp - Din)))

    kernel = functools.partial(_resblock_kernel, hp=Hp, matmul_dtype=md)

    grid = (Bp // bb,)
    const2d = lambda i: (0, 0)          # weights / biases: VMEM-resident across steps
    in_specs = [
        pl.BlockSpec((bb, S, Dp), lambda i: (i, 0, 0)),
        pl.BlockSpec((Dp, 2 * Hp), const2d),
        pl.BlockSpec((1, 2 * Hp), const2d),
        pl.BlockSpec((Hp, 3 * Hp), const2d),
        pl.BlockSpec((1, 3 * Hp), const2d),
        pl.BlockSpec((Hp, Hp), const2d),
        pl.BlockSpec((1, Hp), const2d),
    ]
    out_specs = pl.BlockSpec((bb, S, Hp), lambda i: (i, 0, 0))

    # Advisory cost estimate so XLA can schedule around the custom call.
    n_rows = Bp * S
    flops = int(2 * n_rows * (Dp * 2 * Hp + Hp * 3 * Hp + Hp * Hp)
                + 2 * 2 * Bp * S * S * Hp)
    transcendentals = int(Bp * S * S + Bp * S)
    bytes_accessed = int(xp.nbytes + fused["wx"].nbytes + fused["bx"].nbytes
                         + fused["wqkv"].nbytes + fused["bqkv"].nbytes
                         + fused["w2"].nbytes + fused["b2"].nbytes
                         + Bp * S * Hp * 4)

    out = pl.pallas_call(
        kernel,
        out_shape=jax.ShapeDtypeStruct((Bp, S, Hp), jnp.float32),
        grid=grid,
        in_specs=in_specs,
        out_specs=out_specs,
        compiler_params=pltpu.CompilerParams(
            dimension_semantics=("parallel",),
            vmem_limit_bytes=48 * 1024 * 1024,   # > 32 MiB default, < v7x 64 MiB physical
        ),
        cost_estimate=pl.CostEstimate(flops=flops,
                                      transcendentals=transcendentals,
                                      bytes_accessed=bytes_accessed),
    )(xp, fused["wx"], fused["bx"], fused["wqkv"], fused["bqkv"],
      fused["w2"], fused["b2"])

    return out[:B, :, :H]


# --------------------------------------------------------------------------------------
# Pure-JAX reference + synthetic init
# --------------------------------------------------------------------------------------
def reference_forward(x, params):
    """Pure-JAX reference mirroring the PyTorch module exactly (f32)."""
    h = jax.nn.relu(x @ params["w1"] + params["b1"][0])
    q = h @ params["wq"] + params["bq"][0]
    k = h @ params["wk"] + params["bk"][0]
    v = h @ params["wv"] + params["bv"][0]
    scores = q @ jnp.swapaxes(k, -2, -1) / math.sqrt(h.shape[-1])
    p = jax.nn.softmax(scores, axis=-1)
    attn_out = p @ v
    r = attn_out + (x @ params["wsc"] + params["bsc"][0])
    return jax.nn.relu(r @ params["w2"] + params["b2"][0])


def init_params(key, input_dim, hidden_dim):
    """Deterministic synthetic init (torch-Linear-style uniform bounds)."""
    keys = jax.random.split(key, 12)

    def linear(kw, kb, fan_in, fan_out):
        bound = 1.0 / math.sqrt(fan_in)
        w = jax.random.uniform(kw, (fan_in, fan_out), jnp.float32, -bound, bound)
        b = jax.random.uniform(kb, (1, fan_out), jnp.float32, -bound, bound)
        return w, b

    p = {}
    p["w1"], p["b1"] = linear(keys[0], keys[1], input_dim, hidden_dim)
    p["wq"], p["bq"] = linear(keys[2], keys[3], hidden_dim, hidden_dim)
    p["wk"], p["bk"] = linear(keys[4], keys[5], hidden_dim, hidden_dim)
    p["wv"], p["bv"] = linear(keys[6], keys[7], hidden_dim, hidden_dim)
    p["w2"], p["b2"] = linear(keys[8], keys[9], hidden_dim, hidden_dim)
    p["wsc"], p["bsc"] = linear(keys[10], keys[11], input_dim, hidden_dim)
    return p


if __name__ == "__main__":
    B, S, INPUT_DIM, HIDDEN_DIM = 2, 8, 16, 32

    key = jax.random.PRNGKey(0)
    k_x, k_p = jax.random.split(key)
    x = jax.random.normal(k_x, (B, S, INPUT_DIM), jnp.float32)
    params = init_params(k_p, INPUT_DIM, HIDDEN_DIM)
    ref = reference_forward(x, params)

    # Default path: bf16 MXU operands, f32 accumulation (weight prep done once, outside
    # the hot path).
    fused_bf16 = prepare_params(params)                       # matmul_dtype=bf16
    out = jax.block_until_ready(residual_attention_block(x, fused_bf16))
    assert out.shape == (B, S, HIDDEN_DIM)
    assert jnp.allclose(out, ref, atol=5e-2, rtol=5e-2), "bf16-operand path mismatch"

    # f32-operand path: tighter numerics check against the reference.
    fused_f32 = prepare_params(params, matmul_dtype=jnp.float32)
    out_f32 = jax.block_until_ready(residual_attention_block(x, fused_f32))
    assert jnp.allclose(out_f32, ref, atol=2e-3, rtol=2e-3), "f32-operand path mismatch"

    print("KERNEL_OK")
</pallas_src>

<mosaic_0001>
module attributes {stable_mosaic.version = 11 : i64} {
  func.func @_resblock_kernel(%arg0: i32, %arg1: memref<2x8x128xf32, #tpu.memory_space<vmem>>, %arg2: memref<128x256xbf16, #tpu.memory_space<vmem>>, %arg3: memref<1x256xf32, #tpu.memory_space<vmem>>, %arg4: memref<128x384xbf16, #tpu.memory_space<vmem>>, %arg5: memref<1x384xf32, #tpu.memory_space<vmem>>, %arg6: memref<128x128xbf16, #tpu.memory_space<vmem>>, %arg7: memref<1x128xf32, #tpu.memory_space<vmem>>, %arg8: memref<2x8x128xf32, #tpu.memory_space<vmem>>) attributes {dimension_semantics = [#tpu.dimension_semantics<parallel>], iteration_bounds = array<i64: 1>, scalar_prefetch = 0 : i64, scratch_operands = 0 : i64, tpu.core_type = #tpu.core_type<tc>, window_params = [{transform_indices = @transform_0, window_bounds = array<i64: 2, 8, 128>}, {pipeline_mode = #tpu.pipeline_mode<synchronous>, transform_indices = @transform_1, window_bounds = array<i64: 128, 256>}, {pipeline_mode = #tpu.pipeline_mode<synchronous>, transform_indices = @transform_2, window_bounds = array<i64: 1, 256>}, {pipeline_mode = #tpu.pipeline_mode<synchronous>, transform_indices = @transform_3, window_bounds = array<i64: 128, 384>}, {pipeline_mode = #tpu.pipeline_mode<synchronous>, transform_indices = @transform_4, window_bounds = array<i64: 1, 384>}, {pipeline_mode = #tpu.pipeline_mode<synchronous>, transform_indices = @transform_5, window_bounds = array<i64: 128, 128>}, {pipeline_mode = #tpu.pipeline_mode<synchronous>, transform_indices = @transform_6, window_bounds = array<i64: 1, 128>}, {transform_indices = @transform_7, window_bounds = array<i64: 2, 8, 128>}]} {
    %c0 = arith.constant 0 : index
    %c0_0 = arith.constant 0 : index
    %c0_1 = arith.constant 0 : index
    %0 = vector.load %arg1[%c0, %c0_0, %c0_1] : memref<2x8x128xf32, #tpu.memory_space<vmem>>, vector<2x8x128xf32>
    %1 = vector.shape_cast %0 : vector<2x8x128xf32> to vector<16x128xf32>
    %2 = arith.truncf %1 : vector<16x128xf32> to vector<16x128xbf16>
    %c0_2 = arith.constant 0 : index
    %c0_3 = arith.constant 0 : index
    %3 = vector.load %arg2[%c0_2, %c0_3] : memref<128x256xbf16, #tpu.memory_space<vmem>>, vector<128x256xbf16>
    %cst = arith.constant dense<0.000000e+00> : vector<16x256xf32>
    %4 = tpu.matmul %2, %3, %cst {dimension_numbers = #tpu.dot_dimension_numbers<[1], [0], [0], [1], [0, 0, 1, 1], [], []>} : vector<16x128xbf16>, vector<128x256xbf16>, vector<16x256xf32> -> vector<16x256xf32>
    %c0_4 = arith.constant 0 : index
    %c0_5 = arith.constant 0 : index
    %5 = vector.load %arg3[%c0_4, %c0_5] : memref<1x256xf32, #tpu.memory_space<vmem>>, vector<1x256xf32>
    %6 = vector.broadcast %5 : vector<1x256xf32> to vector<16x256xf32>
    %7 = arith.addf %4, %6 : vector<16x256xf32>
    %8 = vector.extract_strided_slice %7 {offsets = [0, 0], sizes = [16, 128], strides = [1, 1]} : vector<16x256xf32> to vector<16x128xf32>
    %cst_6 = arith.constant 0.000000e+00 : f32
    %9 = vector.broadcast %cst_6 : f32 to vector<16x128xf32>
    %10 = arith.maximumf %8, %9 : vector<16x128xf32>
    %11 = vector.extract_strided_slice %7 {offsets = [0, 128], sizes = [16, 128], strides = [1, 1]} : vector<16x256xf32> to vector<16x128xf32>
    %12 = arith.truncf %10 : vector<16x128xf32> to vector<16x128xbf16>
    %c0_7 = arith.constant 0 : index
    %c0_8 = arith.constant 0 : index
    %13 = vector.load %arg4[%c0_7, %c0_8] : memref<128x384xbf16, #tpu.memory_space<vmem>>, vector<128x384xbf16>
    %cst_9 = arith.constant dense<0.000000e+00> : vector<16x384xf32>
    %14 = tpu.matmul %12, %13, %cst_9 {dimension_numbers = #tpu.dot_dimension_numbers<[1], [0], [0], [1], [0, 0, 1, 1], [], []>} : vector<16x128xbf16>, vector<128x384xbf16>, vector<16x384xf32> -> vector<16x384xf32>
    %c0_10 = arith.constant 0 : index
    %c0_11 = arith.constant 0 : index
    %15 = vector.load %arg5[%c0_10, %c0_11] : memref<1x384xf32, #tpu.memory_space<vmem>>, vector<1x384xf32>
    %16 = vector.broadcast %15 : vector<1x384xf32> to vector<16x384xf32>
    %17 = arith.addf %14, %16 : vector<16x384xf32>
    %18 = vector.extract_strided_slice %17 {offsets = [0, 0], sizes = [16, 128], strides = [1, 1]} : vector<16x384xf32> to vector<16x128xf32>
    %19 = vector.shape_cast %18 : vector<16x128xf32> to vector<2x8x128xf32>
    %20 = vector.extract_strided_slice %17 {offsets = [0, 128], sizes = [16, 128], strides = [1, 1]} : vector<16x384xf32> to vector<16x128xf32>
    %21 = vector.shape_cast %20 : vector<16x128xf32> to vector<2x8x128xf32>
    %22 = vector.extract_strided_slice %17 {offsets = [0, 256], sizes = [16, 128], strides = [1, 1]} : vector<16x384xf32> to vector<16x128xf32>
    %23 = vector.shape_cast %22 : vector<16x128xf32> to vector<2x8x128xf32>
    %24 = arith.truncf %19 : vector<2x8x128xf32> to vector<2x8x128xbf16>
    %25 = arith.truncf %21 : vector<2x8x128xf32> to vector<2x8x128xbf16>
    "tpu.trace_start"() <{level = 10 : i32, message = "bqd,bkd->bqk"}> : () -> ()
    %cst_12 = arith.constant dense<0.000000e+00> : vector<2x8x8xf32>
    %26 = tpu.matmul %24, %25, %cst_12 {dimension_numbers = #tpu.dot_dimension_numbers<[2], [2], [1], [1], [0, 0, 0, 1, 1, 1], [0], [0]>} : vector<2x8x128xbf16>, vector<2x8x128xbf16>, vector<2x8x8xf32> -> vector<2x8x8xf32>
    "tpu.trace_stop"() : () -> ()
    %cst_13 = arith.constant dense<0xFF800000> : vector<2x8xf32>
    %27 = vector.multi_reduction <maximumf>, %26, %cst_13 [2] : vector<2x8x8xf32> to vector<2x8xf32>
    %28 = vector.shape_cast %27 : vector<2x8xf32> to vector<2x8x1xf32>
    %29 = vector.broadcast %28 : vector<2x8x1xf32> to vector<2x8x8xf32>
    %30 = arith.subf %26, %29 : vector<2x8x8xf32>
    %31 = math.exp %30 : vector<2x8x8xf32>
    %cst_14 = arith.constant dense<0.000000e+00> : vector<2x8xf32>
    %32 = vector.multi_reduction <add>, %31, %cst_14 [2] : vector<2x8x8xf32> to vector<2x8xf32>
    %33 = vector.shape_cast %32 : vector<2x8xf32> to vector<2x8x1xf32>
    %34 = arith.truncf %31 : vector<2x8x8xf32> to vector<2x8x8xbf16>
    %35 = arith.truncf %23 : vector<2x8x128xf32> to vector<2x8x128xbf16>
    "tpu.trace_start"() <{level = 10 : i32, message = "bqk,bkd->bqd"}> : () -> ()
    %cst_15 = arith.constant dense<0.000000e+00> : vector<2x8x128xf32>
    %36 = tpu.matmul %34, %35, %cst_15 {dimension_numbers = #tpu.dot_dimension_numbers<[2], [1], [1], [2], [0, 0, 0, 1, 1, 2], [0], [0]>} : vector<2x8x8xbf16>, vector<2x8x128xbf16>, vector<2x8x128xf32> -> vector<2x8x128xf32>
    "tpu.trace_stop"() : () -> ()
    %37 = tpu.reciprocal %33 {approx = true} : vector<2x8x1xf32> -> vector<2x8x1xf32>
    %38 = vector.broadcast %37 : vector<2x8x1xf32> to vector<2x8x128xf32>
    %39 = arith.mulf %36, %38 : vector<2x8x128xf32>
    %40 = vector.shape_cast %39 : vector<2x8x128xf32> to vector<16x128xf32>
    %41 = arith.addf %40, %11 : vector<16x128xf32>
    %42 = arith.truncf %41 : vector<16x128xf32> to vector<16x128xbf16>
    %c0_16 = arith.constant 0 : index
    %c0_17 = arith.constant 0 : index
    %43 = vector.load %arg6[%c0_16, %c0_17] : memref<128x128xbf16, #tpu.memory_space<vmem>>, vector<128x128xbf16>
    %cst_18 = arith.constant dense<0.000000e+00> : vector<16x128xf32>
    %44 = tpu.matmul %42, %43, %cst_18 {dimension_numbers = #tpu.dot_dimension_numbers<[1], [0], [0], [1], [0, 0, 1, 1], [], []>} : vector<16x128xbf16>, vector<128x128xbf16>, vector<16x128xf32> -> vector<16x128xf32>
    %c0_19 = arith.constant 0 : index
    %c0_20 = arith.constant 0 : index
    %45 = vector.load %arg7[%c0_19, %c0_20] : memref<1x128xf32, #tpu.memory_space<vmem>>, vector<1x128xf32>
    %46 = vector.broadcast %45 : vector<1x128xf32> to vector<16x128xf32>
    %47 = arith.addf %44, %46 : vector<16x128xf32>
    %cst_21 = arith.constant 0.000000e+00 : f32
    %48 = vector.broadcast %cst_21 : f32 to vector<16x128xf32>
    %49 = arith.maximumf %47, %48 : vector<16x128xf32>
    %50 = vector.shape_cast %49 : vector<16x128xf32> to vector<2x8x128xf32>
    %c0_22 = arith.constant 0 : index
    %c0_23 = arith.constant 0 : index
    %c0_24 = arith.constant 0 : index
    %51 = vector.load %arg8[%c0_22, %c0_23, %c0_24] : memref<2x8x128xf32, #tpu.memory_space<vmem>>, vector<2x8x128xf32>
    tpu.vector_store %arg8[%c0_22, %c0_23, %c0_24], %50 {strides = array<i32>} : memref<2x8x128xf32, #tpu.memory_space<vmem>>, vector<2x8x128xf32>,
    return
  }
  func.func @transform_0(%arg0: i32) -> (i32, i32, i32) {
    %c0_i32 = arith.constant 0 : i32
    %c0_i32_0 = arith.constant 0 : i32
    %c0_i32_1 = arith.constant 0 : i32
    return %arg0, %c0_i32, %c0_i32_0 : i32, i32, i32
  }
  func.func @transform_1(%arg0: i32) -> (i32, i32) {
    %c0_i32 = arith.constant 0 : i32
    %c0_i32_0 = arith.constant 0 : i32
    %c0_i32_1 = arith.constant 0 : i32
    return %c0_i32, %c0_i32_0 : i32, i32
  }
  func.func @transform_2(%arg0: i32) -> (i32, i32) {
    %c0_i32 = arith.constant 0 : i32
    %c0_i32_0 = arith.constant 0 : i32
    %c0_i32_1 = arith.constant 0 : i32
    return %c0_i32, %c0_i32_0 : i32, i32
  }
  func.func @transform_3(%arg0: i32) -> (i32, i32) {
    %c0_i32 = arith.constant 0 : i32
    %c0_i32_0 = arith.constant 0 : i32
    %c0_i32_1 = arith.constant 0 : i32
    return %c0_i32, %c0_i32_0 : i32, i32
  }
  func.func @transform_4(%arg0: i32) -> (i32, i32) {
    %c0_i32 = arith.constant 0 : i32
    %c0_i32_0 = arith.constant 0 : i32
    %c0_i32_1 = arith.constant 0 : i32
    return %c0_i32, %c0_i32_0 : i32, i32
  }
  func.func @transform_5(%arg0: i32) -> (i32, i32) {
    %c0_i32 = arith.constant 0 : i32
    %c0_i32_0 = arith.constant 0 : i32
    %c0_i32_1 = arith.constant 0 : i32
    return %c0_i32, %c0_i32_0 : i32, i32
  }
  func.func @transform_6(%arg0: i32) -> (i32, i32) {
    %c0_i32 = arith.constant 0 : i32
    %c0_i32_0 = arith.constant 0 : i32
    %c0_i32_1 = arith.constant 0 : i32
    return %c0_i32, %c0_i32_0 : i32, i32
  }
  func.func @transform_7(%arg0: i32) -> (i32, i32, i32) {
    %c0_i32 = arith.constant 0 : i32
    %c0_i32_0 = arith.constant 0 : i32
    %c0_i32_1 = arith.constant 0 : i32
    return %arg0, %c0_i32, %c0_i32_0 : i32, i32, i32
  }
}

</mosaic_0001>

<bundles_post_ra>
// kernel: tpu_custom_call.1
= control target key start
LH: loop header
LB: loop body
LE: loop exit
PB: predicated region body
PF: predicated region fallthrough
CT: control target
= control target key end

     0   :  { %12 = vsyncpa [#allocation3], 0  ;;  %s1386_s0 = inlined_call_operand.hbm [shape: f32[2,8,128], index: 0, kind: input, shape index: {}]   ;;  %s1387_s1 = inlined_call_operand.hbm [shape: bf16[128,256], index: 1, kind: input, shape index: {}]   ;;  %s1388_s2 = inlined_call_operand.vmem [shape: f32[1,256], index: 2, kind: input, shape index: {}]   ;;  %s1389_s3 = inlined_call_operand.hbm [shape: bf16[128,384], index: 3, kind: input, shape index: {}]   ;;  %s1390_s4 = inlined_call_operand.vmem [shape: f32[1,384], index: 4, kind: input, shape index: {}]   ;;  %s1391_s5 = inlined_call_operand.hbm [shape: bf16[128,128], index: 5, kind: input, shape index: {}]   ;;  %s1392_s6 = inlined_call_operand.vmem [shape: f32[1,128], index: 6, kind: input, shape index: {}]   ;;  %s1393_s7 = inlined_call_operand.hbm [shape: f32[2,8,128], index: 7, kind: output, shape index: {}]  }
   0x1   :  { %13 = vsyncpa [#allocation6], 0 }
   0x2   :  { %14 = vsyncpa [#allocation9], 0 }
   0x3   :  { %15 = vsyncpa [#allocation4], 0  ;;  %s1188_s24 = smov [#allocation5]   ;;  %s1189_s26 = smov [#allocation2]  }
   0x4   :  { %s33_s25 = sshll.u32 %s1188_s24, 4  ;;  %s21_s27 = sshll.u32 %s1189_s26, 4  ;;  %s34_s25 = int_to_ptr.vmem [resolvable:$true] %s33_s25  ;;  %s1242_s27 = int_to_ptr.vmem [resolvable:$true] %s21_s27 }
   0x5   :  { %s1070_s30 = scalar_lea.hbm %s1387_s1, 2048 }
   0x6   :  { %p1071_p0 = scmp.ne.s32.totalorder %s1387_s1, %s1070_s30  ;;  %p1074_p1 = scmp.lt.u32.totalorder %s1070_s30, %s1387_s1 }
   0x8   :  { %p1076_p2 = pnand %p1074_p1, %p1071_p0 }
   0xa   :  { %1079 = shalt.err (!%p1076_p2)
}
   0xb   :  { %s1080_s12 = scalar_lea.vmem %s34_s25, 2048  ;;  %p1085_p4 = scmp.lt.s32.totalorder %s34_s25, %s34_s25 }
   0xc   :  { %p1081_p3 = scmp.ne.s32.totalorder %s34_s25, %s1080_s12  ;;  %p1086_p5 = scmp.lt.s32.totalorder %s1080_s12, %s1080_s12 }
   0xe   :  { %p1087_p6 = por %p1086_p5, %p1085_p4 }
  0x10   :  { %p1088_p7 = pnand %p1087_p6, %p1081_p3 }
  0x12   :  { %1091 = shalt.err (!%p1088_p7)
}
  0x13   :  { %s1190_s13 = smov 128   ;;  %s1191_s14 = smov 8  }
  0x14   :  { %39 = dma.hbm_to_vmem [thread:$0]  %s1387_s1, 2048, %s34_s25, [#allocation6], %s1190_s13, %s1190_s13, %s1191_s14  }
  0x15   :  { %s1092_s19 = scalar_lea.hbm %s1386_s0, 256 }
  0x16   :  { %p1093_p8 = scmp.ne.s32.totalorder %s1386_s0, %s1092_s19  ;;  %p1096_p9 = scmp.lt.u32.totalorder %s1092_s19, %s1386_s0 }
  0x18   :  { %p1098_p10 = pnand %p1096_p9, %p1093_p8 }
  0x1a   :  { %1101 = shalt.err (!%p1098_p10)
}
  0x1b   :  { %s1102_s24 = scalar_lea.vmem %s1242_s27, 256  ;;  %p1107_p12 = scmp.lt.s32.totalorder %s1242_s27, %s1242_s27 }
  0x1c   :  { %p1103_p11 = scmp.ne.s32.totalorder %s1242_s27, %s1102_s24  ;;  %p1108_p13 = scmp.lt.s32.totalorder %s1102_s24, %s1102_s24 }
  0x1e   :  { %p1109_p0 = por %p1108_p13, %p1107_p12 }
  0x20   :  { %p1110_p1 = pnand %p1109_p0, %p1103_p11 }
  0x22   :  { %1113 = shalt.err (!%p1110_p1)
}
  0x23   :  { %27 = dma.hbm_to_vmem [thread:$0]  %s1386_s0, 256, %s1242_s27, [#allocation3], %s1190_s13, %s1190_s13, %s1191_s14  }
  0x24   :  { %s1192_s26 = smov [#allocation7]   ;;  %s1114_s8 = scalar_lea.hbm %s1389_s3, 3072 }
  0x25   :  { %s47_s28 = sshll.u32 %s1192_s26, 4  ;;  %p1115_p2 = scmp.ne.s32.totalorder %s1389_s3, %s1114_s8  ;;  %s48_s28 = int_to_ptr.vmem [resolvable:$true] %s47_s28 }
  0x26   :  { %p1118_p3 = scmp.lt.u32.totalorder %s1114_s8, %s1389_s3 }
  0x28   :  { %p1120_p4 = pnand %p1118_p3, %p1115_p2 }
  0x2a   :  { %1123 = shalt.err (!%p1120_p4)
}
  0x2b   :  { %s1124_s15 = scalar_lea.vmem %s48_s28, 3072  ;;  %p1129_p6 = scmp.lt.s32.totalorder %s48_s28, %s48_s28 }
  0x2c   :  { %p1125_p5 = scmp.ne.s32.totalorder %s48_s28, %s1124_s15  ;;  %p1130_p7 = scmp.lt.s32.totalorder %s1124_s15, %s1124_s15 }
  0x2e   :  { %p1131_p8 = por %p1130_p7, %p1129_p6 }
  0x30   :  { %p1132_p9 = pnand %p1131_p8, %p1125_p5 }
  0x32   :  { %1135 = shalt.err (!%p1132_p9)
}
  0x33   :  { %s1193_s0 = smov 192   ;;  %s1194_s27 = smov 12  }
  0x34   :  { %53 = dma.hbm_to_vmem [thread:$0]  %s1389_s3, 3072, %s48_s28, [#allocation6], %s1193_s0, %s1193_s0, %s1194_s27  }
  0x35   :  { %s1195_s18 = smov [#allocation8]   ;;  %s1136_s22 = scalar_lea.hbm %s1391_s5, 1024 }
  0x36   :  { %s61_s19 = sshll.u32 %s1195_s18, 4  ;;  %p1137_p10 = scmp.ne.s32.totalorder %s1391_s5, %s1136_s22  ;;  %s62_s19 = int_to_ptr.vmem [resolvable:$true] %s61_s19 }
  0x37   :  { %p1140_p11 = scmp.lt.u32.totalorder %s1136_s22, %s1391_s5 }
  0x39   :  { %p1142_p12 = pnand %p1140_p11, %p1137_p10 }
  0x3b   :  { %1145 = shalt.err (!%p1142_p12)
}
  0x3c   :  { %s1146_s26 = scalar_lea.vmem %s62_s19, 1024  ;;  %p1151_p0 = scmp.lt.s32.totalorder %s62_s19, %s62_s19 }
  0x3d   :  { %p1147_p13 = scmp.ne.s32.totalorder %s62_s19, %s1146_s26  ;;  %p1152_p1 = scmp.lt.s32.totalorder %s1146_s26, %s1146_s26 }
  0x3f   :  { %p1153_p2 = por %p1152_p1, %p1151_p0 }
  0x41   :  { %p1154_p3 = pnand %p1153_p2, %p1147_p13 }
  0x43   :  { %1157 = shalt.err (!%p1154_p3)
}
  0x44   :  { %s1196_s3 = smov 64   ;;  %s1197_s28 = smov 4  }
  0x45   :  { %67 = dma.hbm_to_vmem [thread:$0]  %s1391_s5, 1024, %s62_s19, [#allocation9], %s1196_s3, %s1196_s3, %s1197_s28  }
  0x46   :  { %1180 = dma.done.wait [#allocation3], 256  }
  0x47   :  { %1181 = vsyncadd [#allocation3], 4294967040 }
  0x48   :  { %1182 = dma.done.wait [#allocation6], 5120  }
  0x49   :  { %1183 = vsyncadd [#allocation6], 4294962176 }
  0x4a   :  { %1184 = dma.done.wait [#allocation9], 1024  }
  0x4b   :  { %1185 = vsyncadd [#allocation9], 4294966272  ;;  %v1198_v0 = vmov 0   ;;  %v998_v1 = vld [vmem:[#allocation5 + $0x4] ss:$8 sps:$4 sm:$0xff]   ;;  %v83_v26 = vld [vmem:[#allocation2] sm:$0xff]  ;;  %v104_v45 = vlaneseq }
  0x4c   :  { %226 = vmatprep.mubr.bf16.mxu0 %v1198_v0  ;;  %449 = vmatprep.mubr.bf16.mxu1 %v1198_v0  ;;  %v1000_v2 = vld [vmem:[#allocation5] ss:$8 sps:$4 sm:$0xff]   ;;  %v1001_v3 = vld [vmem:[#allocation5 + $0x14] ss:$8 sps:$4 sm:$0xff]   ;;  %v1003_v4 = vld [vmem:[#allocation5 + $0x10] ss:$8 sps:$4 sm:$0xff]  }
  0x4d   :  { %194 = vmatprep.subr.bf16.mxu0 %v998_v1  ;;  %v1004_v5 = vld [vmem:[#allocation5 + $0x24] ss:$8 sps:$4 sm:$0xff]   ;;  %v1006_v6 = vld [vmem:[#allocation5 + $0x20] ss:$8 sps:$4 sm:$0xff]   ;;  %v1007_v7 = vld [vmem:[#allocation5 + $0x34] ss:$8 sps:$4 sm:$0xff]  }
  0x4e   :  { %195 = vmatpush1.bf16.msra.mxu0 %v1000_v2  ;;  %v1009_v8 = vld [vmem:[#allocation5 + $0x30] ss:$8 sps:$4 sm:$0xff]   ;;  %v1010_v9 = vld [vmem:[#allocation5 + $0x44] ss:$8 sps:$4 sm:$0xff]   ;;  %v1012_v12 = vld [vmem:[#allocation5 + $0x40] ss:$8 sps:$4 sm:$0xff]  }
  0x4f   :  { %196 = vmatprep.subr.bf16.mxu0 %v1001_v3  ;;  %v1022_v10 = vld [vmem:[#allocation7 + $0x4] ss:$12 sps:$4 sm:$0xff]   ;;  %v1024_v11 = vld [vmem:[#allocation7] ss:$12 sps:$4 sm:$0xff]   ;;  %v1013_v13 = vld [vmem:[#allocation5 + $0x54] ss:$8 sps:$4 sm:$0xff]  }
  0x50   :  { %417 = vmatprep.subr.bf16.mxu1 %v1022_v10  ;;  %v1026_v14 = vld [vmem:[#allocation7 + $0x1c] ss:$12 sps:$4 sm:$0xff]   ;;  %v1028_v15 = vld [vmem:[#allocation7 + $0x18] ss:$12 sps:$4 sm:$0xff]   ;;  %v1030_v16 = vld [vmem:[#allocation7 + $0x34] ss:$12 sps:$4 sm:$0xff]  }
  0x51   :  { %418 = vmatpush1.bf16.msra.mxu1 %v1024_v11  ;;  %v1015_v17 = vld [vmem:[#allocation5 + $0x50] ss:$8 sps:$4 sm:$0xff]   ;;  %v1016_v18 = vld [vmem:[#allocation5 + $0x64] ss:$8 sps:$4 sm:$0xff]   ;;  %v1018_v21 = vld [vmem:[#allocation5 + $0x60] ss:$8 sps:$4 sm:$0xff]  }
  0x52   :  { %197 = vmatpush1.bf16.msra.mxu0 %v1003_v4  ;;  %419 = vmatprep.subr.bf16.mxu1 %v1026_v14  ;;  %v1032_v19 = vld [vmem:[#allocation7 + $0x30] ss:$12 sps:$4 sm:$0xff]   ;;  %v1034_v20 = vld [vmem:[#allocation7 + $0x4c] ss:$12 sps:$4 sm:$0xff]   ;;  %v1036_v23 = vld [vmem:[#allocation7 + $0x48] ss:$12 sps:$4 sm:$0xff]  }
  0x53   :  { %198 = vmatprep.subr.bf16.mxu0 %v1004_v5  ;;  %v1019_v22 = vld [vmem:[#allocation5 + $0x74] ss:$8 sps:$4 sm:$0xff]   ;;  %v1038_v24 = vld [vmem:[#allocation7 + $0x64] ss:$12 sps:$4 sm:$0xff]   ;;  %v1040_v28 = vld [vmem:[#allocation7 + $0x60] ss:$12 sps:$4 sm:$0xff]  }
  0x54   :  { %v1021_v25 = vld [vmem:[#allocation5 + $0x70] ss:$8 sps:$4 sm:$0xff]   ;;  %v1042_v29 = vld [vmem:[#allocation7 + $0x7c] ss:$12 sps:$4 sm:$0xff]   ;;  %v1199_v33 = vmov 0.0   ;;  %vm1200_vm0 = vmmov 0  }
  0x55   :  { %420 = vmatpush1.bf16.msra.mxu1 %v1028_v15  ;;  %v84_v27 = vld [vmem:[#allocation2 + $0x8] sm:$0xff]  ;;  %v1025_v30 = vld [vmem:[#allocation7 + $0x8] ss:$12 sps:$4 sm:$0xff]   ;;  %v1029_v34 = vld [vmem:[#allocation7 + $0x20] ss:$12 sps:$4 sm:$0xff]   ;;  %v1315_v46 = vshrl.u32 %v104_v45, 7 }
  0x56   :  { %199 = vmatpush1.bf16.msra.mxu0 %v1006_v6  ;;  %421 = vmatprep.subr.bf16.mxu1 %v1030_v16  ;;  %v1044_v31 = vld [vmem:[#allocation7 + $0x78] ss:$12 sps:$4 sm:$0xff]   ;;  %v85_v32 = vpack.c.bf16 %v84_v27, %v83_v26  ;;  %v1037_v36 = vld [vmem:[#allocation7 + $0x50] ss:$12 sps:$4 sm:$0xff]   ;;  %v1041_v37 = vld [vmem:[#allocation7 + $0x68] ss:$12 sps:$4 sm:$0xff]  }
  0x57   :  { %200 = vmatprep.subr.bf16.mxu0 %v1007_v7  ;;  %v1033_v35 = vld [vmem:[#allocation7 + $0x38] ss:$12 sps:$4 sm:$0xff]   ;;  %v1045_v38 = vld [vmem:[#allocation7 + $0x80] ss:$12 sps:$4 sm:$0xff]   ;;  %v1048_v40 = vld [vmem:[#allocation7 + $0x90] ss:$12 sps:$4 sm:$0xff]  }
  0x58   :  { %v1046_v39 = vld [vmem:[#allocation7 + $0x94] ss:$12 sps:$4 sm:$0xff]   ;;  %v1049_v41 = vld [vmem:[#allocation7 + $0x98] ss:$12 sps:$4 sm:$0xff]   ;;  %v1053_v44 = vld [vmem:[#allocation7 + $0xb0] ss:$12 sps:$4 sm:$0xff]  }
  0x59   :  { %422 = vmatpush1.bf16.msra.mxu1 %v1032_v19  ;;  %v1050_v42 = vld [vmem:[#allocation7 + $0xac] ss:$12 sps:$4 sm:$0xff]   ;;  %v1052_v43 = vld [vmem:[#allocation7 + $0xa8] ss:$12 sps:$4 sm:$0xff]   ;;  %v106_v47 = vsub.s32 0, %v1315_v46  ;;  %v110_v60 = vsub.s32 1, %v1315_v46 }
  0x5a   :  { %201 = vmatpush1.bf16.msra.mxu0 %v1009_v8  ;;  %423 = vmatprep.subr.bf16.mxu1 %v1034_v20  ;;  %v1321_v48 = vld [vmem:[%s1388_s2] sm:$0x3]  ;;  %v284_v61 = vsub.s32 2, %v1315_v46  ;;  %vm611_vm1 = vcmask 1043456   ;;  %vm585_vm2 = vcmask 64512   ;;  %s1201_s11 = smov [#allocation10]  }
  0x5b   :  { %202 = vmatprep.subr.bf16.mxu0 %v1010_v9  ;;  %v107_v49 = vrot.slane %v1321_v48, %v106_v47  ;;  %v272_v59 = vld [vmem:[%s1390_s4] sm:$0x7]  ;;  %s829_s12 = sshll.u32 %s1201_s11, 4  ;;  %s830_s12 = int_to_ptr.vmem [resolvable:$true] %s829_s12 }
  0x5c   :  { %v281_v62 = vrot.slane %v272_v59, %v110_v60  ;;  %v285_v1 = vrot.slane %v272_v59, %v284_v61  ;;  %v277_v7 = vrot.slane %v272_v59, %v106_v47  ;;  %v1054_v47 = vld [vmem:[#allocation8] sm:$0xff]   ;;  %v111_v61 = vrot.slane %v1321_v48, %v110_v60  ;;  %s1158_s15 = scalar_lea.vmem %s830_s12, 256  ;;  %p1163_p5 = scmp.lt.s32.totalorder %s830_s12, %s830_s12 }
  0x5d   :  { %424 = vmatpush1.bf16.msra.mxu1 %v1036_v23  ;;  %p1159_p4 = scmp.ne.s32.totalorder %s830_s12, %s1158_s15  ;;  %p1164_p6 = scmp.lt.s32.totalorder %s1158_s15, %s1158_s15 }
  0x5e   :  { %203 = vmatpush1.bf16.msra.mxu0 %v1012_v12  ;;  %425 = vmatprep.subr.bf16.mxu1 %v1038_v24 }
  0x5f   :  { %204 = vmatprep.subr.bf16.mxu0 %v1013_v13  ;;  %p1165_p7 = por %p1164_p6, %p1163_p5 }
  0x61   :  { %426 = vmatpush1.bf16.msra.mxu1 %v1040_v28  ;;  %p1166_p8 = pnand %p1165_p7, %p1159_p4 }
  0x62   :  { %205 = vmatpush1.bf16.msra.mxu0 %v1015_v17  ;;  %427 = vmatprep.subr.bf16.mxu1 %v1042_v29 }
  0x63   :  { %206 = vmatprep.subr.bf16.mxu0 %v1016_v18 }
  0x65   :  { %428 = vmatpush1.bf16.msra.mxu1 %v1044_v31 }
  0x66   :  { %207 = vmatpush1.bf16.msra.mxu0 %v1018_v21  ;;  %429 = vmatprep.subr.bf16.mxu1 %v1046_v39 }
  0x67   :  { %208 = vmatprep.subr.bf16.mxu0 %v1019_v22 }
  0x69   :  { %430 = vmatpush1.bf16.msra.mxu1 %v1048_v40 }
  0x6a   :  { %209 = vmatpush1.bf16.msra.mxu0 %v1021_v25  ;;  %431 = vmatprep.subr.bf16.mxu1 %v1050_v42 }
  0x6b   :  { %920 = vmatprep.subr.bf16.mxu0 %v1199_v33 }
  0x6d   :  { %227 = vmatmul.mubr.bf16.vlgmr.msra.gmra.mrb[0].mxu0 %v85_v32  ;;  %432 = vmatpush1.bf16.msra.mxu1 %v1052_v43 }
  0x6e   :  { %921 = vmatpush3.bf16.msra.mxu0 %v1025_v30  ;;  %940 = vmatprep.subr.bf16.mxu1 %v1199_v33 }
  0x6f   :  { %922 = vmatprep.subr.bf16.mxu0 %v1199_v33  ;;  %936 = vmatprep.mubr.msk.bf16.mxu0 %vm1200_vm0, %v1199_v33 }
  0x72   :  { %923 = vmatpush3.bf16.msra.mxu0 %v1029_v34 }
  0x73   :  { %924 = vmatprep.subr.bf16.mxu0 %v1199_v33 }
  0x76   :  { %925 = vmatpush3.bf16.msra.mxu0 %v1033_v35 }
  0x77   :  { %926 = vmatprep.subr.bf16.mxu0 %v1199_v33 }
  0x7a   :  { %927 = vmatpush3.bf16.msra.mxu0 %v1037_v36 }
  0x7b   :  { %928 = vmatprep.subr.bf16.mxu0 %v1199_v33 }
  0x7e   :  { %929 = vmatpush3.bf16.msra.mxu0 %v1041_v37 }
  0x7f   :  { %930 = vmatprep.subr.bf16.mxu0 %v1199_v33 }
  0x82   :  { %931 = vmatpush3.bf16.msra.mxu0 %v1045_v38 }
  0x83   :  { %932 = vmatprep.subr.bf16.mxu0 %v1199_v33 }
  0x86   :  { %933 = vmatpush3.bf16.msra.mxu0 %v1049_v41 }
  0x87   :  { %934 = vmatprep.subr.bf16.mxu0 %v1199_v33 }
  0x8a   :  { %935 = vmatpush3.bf16.msra.mxu0 %v1053_v44 }
  0x8b   :  { %964 = vmatprep.subr.bf16.mxu0 %v1199_v33 }
 0x140   :  { %v228_v50 = vpop.f32.mrb[0].mxu0 }
 0x141   :  { %v229_v51 = vadd.f32 %v228_v50, %v107_v49  ;;  %v1324_v52 = vpop.f32.mrb[1].mxu0  ;;  %v1056_v50 = vld [vmem:[#allocation8 + $0x10] sm:$0xff]  }
 0x142   :  { %v232_v53 = vpop.f32.mrb[2].mxu0 }
 0x143   :  { %v233_v54 = vadd.f32 %v232_v53, %v107_v49  ;;  %v1326_v55 = vpop.f32.mrb[3].mxu0  ;;  %v237_v56 = vmax.f32 %v229_v51, 0.0  ;;  %v1055_v49 = vld [vmem:[#allocation8 + $0x8] sm:$0xff]   ;;  %v1057_v51 = vld [vmem:[#allocation8 + $0x18] sm:$0xff]   ;;  %v1058_v53 = vld [vmem:[#allocation8 + $0x20] sm:$0xff]  }
 0x145   :  { %v238_v57 = vmax.f32 %v233_v54, 0.0  ;;  %v1059_v54 = vld [vmem:[#allocation8 + $0x28] sm:$0xff]  }
 0x147   :  { %v239_v58 = vpack.c.bf16 %v238_v57, %v237_v56  ;;  %v1060_v56 = vld [vmem:[#allocation8 + $0x30] sm:$0xff]   ;;  %v1061_v57 = vld [vmem:[#allocation8 + $0x38] sm:$0xff]  }
 0x149   :  { %450 = vmatmul.mubr.bf16.vlgmr.msra.gmra.mrb[0].mxu1 %v239_v58  ;;  %937 = vmatmul.mubr.bf16.vlgmr.msra.gmra.mrb[4].mxu0 %v239_v58 }
 0x14a   :  { %942 = vmatprep.mubr.msk.bf16.mxu1 %vm1200_vm0, %v1199_v33  ;;  %980 = vmatprep.mubr.msk.bf16.mxu0 %vm1200_vm0, %v1199_v33 }
 0x14b   :  { %965 = vmatpush3.bf16.msra.mxu0 %v1054_v47 }
 0x14c   :  { %966 = vmatprep.subr.bf16.mxu0 %v1199_v33 }
 0x14f   :  { %967 = vmatpush3.bf16.msra.mxu0 %v1055_v49 }
 0x150   :  { %968 = vmatprep.subr.bf16.mxu0 %v1199_v33 }
 0x153   :  { %969 = vmatpush3.bf16.msra.mxu0 %v1056_v50 }
 0x154   :  { %970 = vmatprep.subr.bf16.mxu0 %v1199_v33 }
 0x157   :  { %971 = vmatpush3.bf16.msra.mxu0 %v1057_v51 }
 0x158   :  { %972 = vmatprep.subr.bf16.mxu0 %v1199_v33 }
 0x15b   :  { %973 = vmatpush3.bf16.msra.mxu0 %v1058_v53 }
 0x15c   :  { %974 = vmatprep.subr.bf16.mxu0 %v1199_v33 }
 0x15f   :  { %975 = vmatpush3.bf16.msra.mxu0 %v1059_v54 }
 0x160   :  { %976 = vmatprep.subr.bf16.mxu0 %v1199_v33 }
 0x163   :  { %977 = vmatpush3.bf16.msra.mxu0 %v1060_v56 }
 0x164   :  { %978 = vmatprep.subr.bf16.mxu0 %v1199_v33 }
 0x167   :  { %979 = vmatpush3.bf16.msra.mxu0 %v1061_v57 }
 0x21c   :  { %v451_v63 = vpop.f32.mrb[0].mxu1  ;;  %v494_v0 = vpop.f32.mrb[4].mxu0 }
 0x21d   :  { %v453_v2 = vpop.f32.mrb[1].mxu1  ;;  %v938_v3 = vpop.f32.mrb[5].mxu0  ;;  %v452_v13 = vadd.f32 %v451_v63, %v277_v7  ;;  %v495_v18 = vadd.f32 %v494_v0, %v285_v1  ;;  %v231_v0 = vadd.f32 %v1324_v52, %v111_v61  ;;  %v885_v52 = vld [vmem:[%s1392_s6] ss:$0 sm:$0xff] }
 0x21e   :  { %v454_v4 = vadd.f32 %v453_v2, %v281_v62  ;;  %v455_v5 = vpop.f32.mrb[2].mxu1  ;;  %v497_v6 = vpop.f32.mrb[6].mxu0 }
 0x21f   :  { %v498_v8 = vadd.f32 %v497_v6, %v285_v1  ;;  %v457_v9 = vpop.f32.mrb[3].mxu1  ;;  %v939_v10 = vpop.f32.mrb[7].mxu0  ;;  %v501_v16 = vpack.c.bf16 %v452_v13, %v452_v13  ;;  %v456_v19 = vadd.f32 %v455_v5, %v277_v7  ;;  %v606_v20 = vpack.c.bf16 %v495_v18, %v495_v18 }
 0x220   :  { %v503_v11 = vpack.c.bf16 %v454_v4, %v454_v4  ;;  %v458_v15 = vadd.f32 %v457_v9, %v281_v62  ;;  %v235_v7 = vadd.f32 %v1326_v55, %v111_v61 }
 0x221   :  { %v607_v12 = vpack.c.bf16 %v498_v8, %v498_v8  ;;  %v502_v21 = vpack.c.bf16 %v456_v19, %v456_v19  ;;  %v613_v22 = vsel %vm611_vm1, %v606_v20, 0 }
 0x222   :  { %941 = vmatpush3.bf16.xpose.msra.mxu1 %v503_v11  ;;  %v504_v17 = vpack.c.bf16 %v458_v15, %v458_v15 }
 0x223   :  { %v659_v14 = vsel %vm611_vm1, %v607_v12, 0  ;;  %946 = vmatprep.subr.bf16.mxu1 %v1199_v33 }
 0x229   :  { %943 = vmatmul.mubr.bf16.vlgmr.msra.gmra.mrb[4].mxu1 %v501_v16 }
 0x22a   :  { %947 = vmatpush3.bf16.xpose.msra.mxu1 %v504_v17  ;;  %948 = vmatprep.mubr.msk.bf16.mxu1 %vm1200_vm0, %v1199_v33 }
 0x22b   :  { %952 = vmatprep.subr.bf16.mxu1 %v1199_v33 }
 0x231   :  { %949 = vmatmul.mubr.bf16.vlgmr.msra.gmra.mrb[8].mxu1 %v502_v21 }
 0x232   :  { %953 = vmatpush3.bf16.msra.mxu1 %v613_v22  ;;  %954 = vmatprep.mubr.msk.bf16.mxu1 %vm1200_vm0, %v1199_v33 }
 0x233   :  { %958 = vmatprep.subr.bf16.mxu1 %v1199_v33 }
 0x2fc   :  { %v539_v23 = vpop.f32.mrb[4].mxu1 }
 0x2fd   :  { %v944_v24 = vpop.f32.mrb[5].mxu1  ;;  %v586_v25 = vsel %vm585_vm2, %v539_v23, -inf }
 0x2fe   :  { %587 = vmax.xlane.f32.xlu0 %v586_v25  ;;  %v542_v26 = vpop.f32.mrb[6].mxu1 }
 0x2ff   :  { %v945_v27 = vpop.f32.mrb[7].mxu1 }
 0x304   :  { %v579_v28 = vpop.f32.mrb[8].mxu1 }
 0x305   :  { %v950_v29 = vpop.f32.mrb[9].mxu1  ;;  %v589_v30 = vsel %vm585_vm2, %v579_v28, -inf }
 0x306   :  { %590 = vmax.xlane.f32.xlu0 %v589_v30  ;;  %v582_v31 = vpop.f32.mrb[10].mxu1 }
 0x307   :  { %v951_v32 = vpop.f32.mrb[11].mxu1 }
 0x38b   :  { %v588_v34 = vpop.xlane.xlu0 %587 }
 0x38c   :  { %v592_v35 = vsub.f32 %v539_v23, %v588_v34 }
 0x38e   :  { %v594_v36 = vmul.f32 1.442695, %v592_v35 }
 0x390   :  { %1062 = vpow2.f32 %v594_v36 }
 0x393   :  { %v591_v37 = vpop.xlane.xlu0 %590 }
 0x394   :  { %v593_v38 = vsub.f32 %v579_v28, %v591_v37 }
 0x396   :  { %v596_v39 = vmul.f32 1.442695, %v593_v38 }
 0x398   :  { %1064 = vpow2.f32 %v596_v39 }
 0x39a   :  { %v1063_v40 = vpop.eup %1062 }
 0x39b   :  { %v598_v41 = vsel %vm585_vm2, %v1063_v40, 0.0  ;;  %v604_v42 = vpack.c.bf16 %v1063_v40, %v1063_v40 }
 0x39c   :  { %599 = vadd.xlane.f32.xlu1 %v598_v41 }
 0x39d   :  { %955 = vmatmul.mubr.msk.bf16.vlgmr.msra.gmra.mrb[12].mxu1 %vm585_vm2, %v604_v42 }
 0x39e   :  { %959 = vmatpush3.bf16.msra.mxu1 %v659_v14  ;;  %960 = vmatprep.mubr.msk.bf16.mxu1 %vm1200_vm0, %v1199_v33 }
 0x3a2   :  { %v1065_v43 = vpop.eup %1064 }
 0x3a3   :  { %v601_v44 = vsel %vm585_vm2, %v1065_v43, 0.0  ;;  %v605_v45 = vpack.c.bf16 %v1065_v43, %v1065_v43 }
 0x3a4   :  { %602 = vadd.xlane.f32.xlu1 %v601_v44 }
 0x3a5   :  { %961 = vmatmul.mubr.msk.bf16.vlgmr.msra.gmra.mrb[16].mxu1 %vm585_vm2, %v605_v45 }
 0x429   :  { %v600_v58 = vpop.xlane.xlu1 %599 }
 0x42a   :  { %1066 = vrcp.f32 %v600_v58 }
 0x431   :  { %v603_v59 = vpop.xlane.xlu1 %602 }
 0x432   :  { %1068 = vrcp.f32 %v603_v59 }
 0x434   :  { %v1067_v62 = vpop.eup %1066 }
 0x43c   :  { %v1069_v33 = vpop.eup %1068 }
 0x470   :  { %v649_v63 = vpop.f32.mrb[12].mxu1 }
 0x471   :  { %v703_v1 = vmul.f32 %v1067_v62, %v649_v63  ;;  %v956_v2 = vpop.f32.mrb[13].mxu1 }
 0x472   :  { %v652_v3 = vpop.f32.mrb[14].mxu1 }
 0x473   :  { %v705_v4 = vadd.f32 %v703_v1, %v231_v0  ;;  %v957_v5 = vpop.f32.mrb[15].mxu1 }
 0x478   :  { %v695_v6 = vpop.f32.mrb[16].mxu1 }
 0x479   :  { %v704_v8 = vmul.f32 %v1069_v33, %v695_v6  ;;  %v962_v9 = vpop.f32.mrb[17].mxu1 }
 0x47a   :  { %v698_v10 = vpop.f32.mrb[18].mxu1 }
 0x47b   :  { %v706_v46 = vadd.f32 %v704_v8, %v235_v7  ;;  %v963_v11 = vpop.f32.mrb[19].mxu1 }
 0x47d   :  { %v707_v48 = vpack.c.bf16 %v706_v46, %v705_v4 }
 0x47f   :  { %981 = vmatmul.mubr.bf16.vlgmr.msra.gmra.mrb[8].mxu0 %v707_v48 }
 0x552   :  { %v813_v60 = vpop.f32.mrb[8].mxu0 }
 0x553   :  { %v814_v12 = vadd.f32 %v885_v52, %v813_v60  ;;  %v982_v13 = vpop.f32.mrb[9].mxu0 }
 0x554   :  { %v816_v14 = vpop.f32.mrb[10].mxu0 }
 0x555   :  { %v820_v15 = vmax.f32 %v814_v12, 0.0  ;;  %v817_v16 = vadd.f32 %v885_v52, %v816_v14  ;;  %v983_v55 = vpop.f32.mrb[11].mxu0 }
 0x557   :  { %822 = vst [vmem:[#allocation10] sm:$0xff] %v820_v15  ;;  %v821_v17 = vmax.f32 %v817_v16, 0.0 }
 0x559   :  { %823 = vst [vmem:[#allocation10 + $0x8] sm:$0xff] %v821_v17 }
 0x55a   :  { %1169 = shalt.err (!%p1166_p8)
}
 0x55b   :  { %s1170_s27 = scalar_lea.hbm %s1393_s7, 256 }
 0x55c   :  { %p1171_p9 = scmp.ne.s32.totalorder %s1393_s7, %s1170_s27  ;;  %p1174_p10 = scmp.lt.u32.totalorder %s1170_s27, %s1393_s7 }
 0x55e   :  { %p1176_p11 = pnand %p1174_p10, %p1171_p9 }
 0x560   :  { %1179 = shalt.err (!%p1176_p11)
}
 0x561   :  { %835 = dma.vmem_to_hbm [thread:$0]  %s830_s12, 256, %s1393_s7, [#allocation4], %s1190_s13, %s1190_s13, %s1191_s14  }
 0x562   :  { %1186 = dma.done.wait [#allocation4], 256  }
 0x563   :  { %1187 = vsyncadd [#allocation4], 4294967040 }
 0x564   :  { %839 = vsyncpa [#allocation3], 1 }
 0x565   :  { %840 = vsyncpa [#allocation6], 1 }
 0x566   :  { %841 = vsyncpa [#allocation9], 1 }
 0x567   :  { %842 = vsyncpa [#allocation4], 1 }

</bundles_post_ra>
